<compile_context>
chip_gen: v5e
topology: v5e:2x2
jax: 0.10.0
libtpu: 0.0.40
codegen_flags: <defaults>
</compile_context>

<pallas_src>
import jax
import jax.numpy as jnp
from jax.experimental import pallas as pl
from jax.experimental.pallas import tpu as pltpu

_LANE = 128


def _round_up(n, m):
    return ((n + m - 1) // m) * m


def _device_kind():
    try:
        return jax.devices()[0].device_kind.lower()
    except Exception:
        return ""


def _is_v7x():
    k = _device_kind()
    return ("v7" in k) or ("7x" in k)


def _has_bf16_vpu():
    # v6e / v7x have bf16 VALU + EUP; v5e and older do not.
    k = _device_kind()
    return ("v6" in k) or ("v7" in k) or ("7x" in k)


def _mlp_kernel(x_ref, w1_ref, b1_ref, w2_ref, b2_ref, w3_ref, b3_ref, out_ref):
    cdt = w1_ref.dtype   # MXU operand dtype (f32 or bf16); accumulation is f32.
    edt = b1_ref.dtype   # elementwise (bias + tanh) dtype; f32 on v5e.

    x = x_ref[...].astype(cdt)

    # Layer 1: (TB, D) @ (D, 50) on the MXU, f32 accumulate, tanh on the EUP.
    h1 = jnp.dot(x, w1_ref[...], preferred_element_type=jnp.float32)
    h1 = jnp.tanh(h1.astype(edt) + b1_ref[...])

    # Layer 2: (TB, 50) @ (50, 50).
    h2 = jnp.dot(h1.astype(cdt), w2_ref[...], preferred_element_type=jnp.float32)
    h2 = jnp.tanh(h2.astype(edt) + b2_ref[...])

    # Prediction head: lane reduction on the VPU/XLU instead of an N=1 MXU
    # pass.  w3 is a lane-dense f32 (1, 50) row; b3 is a scalar in SMEM.  The
    # head always runs in f32.
    pred = jnp.sum(h2.astype(jnp.float32) * w3_ref[...], axis=-1)   # (TB,)
    pred = pred + b3_ref[0]

    # Lane-dense store: (TB,) -> (1, 1, TB).  The sublane->lane relayout uses
    # the XLU slot, which is idle in this kernel; the store itself is unmasked.
    out_ref[...] = pred.reshape(1, 1, -1).astype(out_ref.dtype)


def value_function_forward(x, params, *, tile_batch=1024,
                           compute_dtype=jnp.float32,
                           elementwise_dtype=None,
                           core_parallel=None):
    """x: (B, ob_dim) float32. Returns (B,) float32, matching pred.view(-1).

    compute_dtype=jnp.bfloat16 halves the dominant x HBM stream (recommended
    for inference on all generations); elementwise_dtype defaults to bf16 on
    v6e/v7x (bf16 VALU/EUP) and f32 elsewhere.  core_parallel defaults to True
    on v7x (2 TCs/chip) when there are >= 2 batch tiles.
    """
    w1, b1, w2, b2, w3, b3 = params
    B, ob_dim = x.shape

    # Batch tile: multiple of the 128-lane width, so the x block (tb on
    # sublanes) and the lane-dense output block (tb on lanes) are unmasked.
    tb = min(int(tile_batch), _round_up(B, _LANE))
    tb = max(_round_up(tb, _LANE), _LANE)
    b_pad = _round_up(B, tb)
    n_tiles = b_pad // tb

    if elementwise_dtype is None:
        use_bf16_ew = (jnp.dtype(compute_dtype) == jnp.dtype(jnp.bfloat16)
                       and _has_bf16_vpu())
        elementwise_dtype = jnp.bfloat16 if use_bf16_ew else jnp.float32
    if core_parallel is None:
        core_parallel = _is_v7x() and n_tiles >= 2

    # Cast MXU operands; biases take the elementwise dtype; the head stays f32.
    xc = x.astype(compute_dtype)
    if b_pad != B:
        xc = jnp.pad(xc, ((0, b_pad - B), (0, 0)))
    w1c, w2c = (w.astype(compute_dtype) for w in (w1, w2))
    b1c, b2c = (b.astype(elementwise_dtype) for b in (b1, b2))
    w3f = w3.astype(jnp.float32)                      # never touches the MXU
    b3f = jnp.reshape(b3, (-1,)).astype(jnp.float32)  # scalar -> 1-D SMEM

    # Weights/biases: full-array blocks with constant index_map -> DMA'd once,
    # resident in VMEM across all batch tiles (no per-step re-fetch).
    def resident(a):
        return pl.BlockSpec(a.shape, lambda i: (0,) * a.ndim)

    batch_sem = pltpu.CORE_PARALLEL if core_parallel else "parallel"

    out = pl.pallas_call(
        _mlp_kernel,
        out_shape=jax.ShapeDtypeStruct((n_tiles, 1, tb), jnp.float32),
        grid_spec=pltpu.PrefetchScalarGridSpec(
            num_scalar_prefetch=0,
            grid=(n_tiles,),
            in_specs=[
                pl.BlockSpec((tb, ob_dim), lambda i: (i, 0)),       # x (tiled)
                resident(w1c), resident(b1c),
                resident(w2c), resident(b2c),
                resident(w3f),
                pl.BlockSpec(memory_space=pltpu.MemorySpace.SMEM),  # b3 scalar
            ],
            out_specs=pl.BlockSpec((1, 1, tb), lambda i: (i, 0, 0)),
        ),
        compiler_params=pltpu.CompilerParams(
            dimension_semantics=(batch_sem,),
        ),
    )(xc, w1c, b1c, w2c, b2c, w3f, b3f)

    # pred.view(-1): tiles are consecutive batch rows, so a flat reshape plus
    # dropping the padded tail recovers the original order exactly.
    return out.reshape(-1)[:B]


def init_params(key, ob_dim, hidden=50):
    """PyTorch nn.Linear default init: U(-1/sqrt(fan_in), 1/sqrt(fan_in)).
    w1/w2 stored as (in, out) so the kernel computes x @ W; the head weight w3
    is a lane-dense (1, hidden) row; b3 is a (1, 1) scalar."""
    def uniform(k, shape, fan_in):
        bound = 1.0 / jnp.sqrt(fan_in)
        return jax.random.uniform(k, shape, jnp.float32, -bound, bound)

    k = jax.random.split(key, 6)
    w1 = uniform(k[0], (ob_dim, hidden), ob_dim)
    b1 = uniform(k[1], (1, hidden), ob_dim)
    w2 = uniform(k[2], (hidden, hidden), hidden)
    b2 = uniform(k[3], (1, hidden), hidden)
    w3 = uniform(k[4], (1, hidden), hidden)
    b3 = uniform(k[5], (1, 1), hidden)
    return (w1, b1, w2, b2, w3, b3)


def reference_forward(x, params):
    w1, b1, w2, b2, w3, b3 = params
    h1 = jnp.tanh(x @ w1 + b1)
    h2 = jnp.tanh(h1 @ w2 + b2)
    return jnp.sum(h2 * w3, axis=-1) + b3[0, 0]


# TODO(synk): fit()/predict() (MSELoss + SGD training loop) are host-side
# training utilities, not part of the forward pass; only forward is kernelized.

if __name__ == "__main__":
    key = jax.random.PRNGKey(0)
    k_param, k_x, k_x2 = jax.random.split(key, 3)

    ob_dim = 32
    params = init_params(k_param, ob_dim)

    # Small batch (single 128-row tile; tail rows are padded then sliced off).
    x_small = jax.random.normal(k_x, (8, ob_dim), jnp.float32)
    y = jax.block_until_ready(value_function_forward(x_small, params))
    y_ref = reference_forward(x_small, params)
    assert y.shape == (8,)
    assert jnp.allclose(y, y_ref, atol=1e-4, rtol=1e-4)

    # Larger batch that is NOT a multiple of the tile: exercises the batch
    # grid (4 tiles), resident weights, lane-dense output, and tail padding.
    x_big = jax.random.normal(k_x2, (1000, ob_dim), jnp.float32)
    y_big = jax.block_until_ready(
        value_function_forward(x_big, params, tile_batch=256))
    y_big_ref = reference_forward(x_big, params)
    assert y_big.shape == (1000,)
    assert jnp.allclose(y_big, y_big_ref, atol=1e-4, rtol=1e-4)

    # bf16 operand path (halves the dominant HBM stream); f32 accumulation,
    # f32 head, and (on v6e/v7x) bf16 bias+tanh — loose tolerance for the
    # value head.
    y_bf16 = jax.block_until_ready(
        value_function_forward(x_big, params, tile_batch=256,
                               compute_dtype=jnp.bfloat16))
    assert jnp.allclose(y_bf16, y_big_ref, atol=5e-2, rtol=5e-2)

    print("KERNEL_OK")
</pallas_src>

<mosaic_0001>
module attributes {stable_mosaic.version = 11 : i64} {
  func.func @_mlp_kernel(%arg0: i32, %arg1: memref<128x32xf32, #tpu.memory_space<vmem>>, %arg2: memref<32x50xf32, #tpu.memory_space<vmem>>, %arg3: memref<1x50xf32, #tpu.memory_space<vmem>>, %arg4: memref<50x50xf32, #tpu.memory_space<vmem>>, %arg5: memref<1x50xf32, #tpu.memory_space<vmem>>, %arg6: memref<1x50xf32, #tpu.memory_space<vmem>>, %arg7: memref<1xf32, #tpu.memory_space<smem>>, %arg8: memref<1x1x128xf32, #tpu.memory_space<vmem>>) attributes {dimension_semantics = [#tpu.dimension_semantics<parallel>], iteration_bounds = array<i64: 1>, scalar_prefetch = 0 : i64, scratch_operands = 0 : i64, tpu.core_type = #tpu.core_type<tc>, window_params = [{transform_indices = @transform_0, window_bounds = array<i64: 128, 32>}, {pipeline_mode = #tpu.pipeline_mode<synchronous>, transform_indices = @transform_1, window_bounds = array<i64: 32, 50>}, {pipeline_mode = #tpu.pipeline_mode<synchronous>, transform_indices = @transform_2, window_bounds = array<i64: 1, 50>}, {pipeline_mode = #tpu.pipeline_mode<synchronous>, transform_indices = @transform_3, window_bounds = array<i64: 50, 50>}, {pipeline_mode = #tpu.pipeline_mode<synchronous>, transform_indices = @transform_4, window_bounds = array<i64: 1, 50>}, {pipeline_mode = #tpu.pipeline_mode<synchronous>, transform_indices = @transform_5, window_bounds = array<i64: 1, 50>}, {transform_indices = @transform_6, window_bounds = array<i64: 1>}, {transform_indices = @transform_7, window_bounds = array<i64: 1, 1, 128>}]} {
    %c0 = arith.constant 0 : index
    %c0_0 = arith.constant 0 : index
    %0 = vector.load %arg1[%c0, %c0_0] : memref<128x32xf32, #tpu.memory_space<vmem>>, vector<128x32xf32>
    %c0_1 = arith.constant 0 : index
    %c0_2 = arith.constant 0 : index
    %1 = vector.load %arg2[%c0_1, %c0_2] : memref<32x50xf32, #tpu.memory_space<vmem>>, vector<32x50xf32>
    %cst = arith.constant dense<0.000000e+00> : vector<128x50xf32>
    %2 = tpu.matmul %0, %1, %cst {dimension_numbers = #tpu.dot_dimension_numbers<[1], [0], [0], [1], [0, 0, 1, 1], [], []>} : vector<128x32xf32>, vector<32x50xf32>, vector<128x50xf32> -> vector<128x50xf32>
    %c0_3 = arith.constant 0 : index
    %c0_4 = arith.constant 0 : index
    %3 = vector.load %arg3[%c0_3, %c0_4] : memref<1x50xf32, #tpu.memory_space<vmem>>, vector<1x50xf32>
    %4 = vector.broadcast %3 : vector<1x50xf32> to vector<128x50xf32>
    %5 = arith.addf %2, %4 : vector<128x50xf32>
    %6 = math.tanh %5 : vector<128x50xf32>
    %c0_5 = arith.constant 0 : index
    %c0_6 = arith.constant 0 : index
    %7 = vector.load %arg4[%c0_5, %c0_6] : memref<50x50xf32, #tpu.memory_space<vmem>>, vector<50x50xf32>
    %cst_7 = arith.constant dense<0.000000e+00> : vector<128x50xf32>
    %8 = tpu.matmul %6, %7, %cst_7 {dimension_numbers = #tpu.dot_dimension_numbers<[1], [0], [0], [1], [0, 0, 1, 1], [], []>} : vector<128x50xf32>, vector<50x50xf32>, vector<128x50xf32> -> vector<128x50xf32>
    %c0_8 = arith.constant 0 : index
    %c0_9 = arith.constant 0 : index
    %9 = vector.load %arg5[%c0_8, %c0_9] : memref<1x50xf32, #tpu.memory_space<vmem>>, vector<1x50xf32>
    %10 = vector.broadcast %9 : vector<1x50xf32> to vector<128x50xf32>
    %11 = arith.addf %8, %10 : vector<128x50xf32>
    %12 = math.tanh %11 : vector<128x50xf32>
    %c0_10 = arith.constant 0 : index
    %c0_11 = arith.constant 0 : index
    %13 = vector.load %arg6[%c0_10, %c0_11] : memref<1x50xf32, #tpu.memory_space<vmem>>, vector<1x50xf32>
    %14 = vector.broadcast %13 : vector<1x50xf32> to vector<128x50xf32>
    %15 = arith.mulf %12, %14 : vector<128x50xf32>
    %cst_12 = arith.constant dense<0.000000e+00> : vector<128xf32>
    %16 = vector.multi_reduction <add>, %15, %cst_12 [1] : vector<128x50xf32> to vector<128xf32>
    %c0_13 = arith.constant 0 : index
    %17 = memref.load %arg7[%c0_13] : memref<1xf32, #tpu.memory_space<smem>>
    %18 = vector.broadcast %17 : f32 to vector<128xf32>
    %19 = arith.addf %16, %18 : vector<128xf32>
    %20 = vector.shape_cast %19 : vector<128xf32> to vector<1x1x128xf32>
    %c0_14 = arith.constant 0 : index
    %c0_15 = arith.constant 0 : index
    %c0_16 = arith.constant 0 : index
    %21 = vector.load %arg8[%c0_14, %c0_15, %c0_16] : memref<1x1x128xf32, #tpu.memory_space<vmem>>, vector<1x1x128xf32>
    tpu.vector_store %arg8[%c0_14, %c0_15, %c0_16], %20 {strides = array<i32>} : memref<1x1x128xf32, #tpu.memory_space<vmem>>, vector<1x1x128xf32>,
    return
  }
  func.func @transform_0(%arg0: i32) -> (i32, i32) {
    %c0_i32 = arith.constant 0 : i32
    %c0_i32_0 = arith.constant 0 : i32
    return %arg0, %c0_i32 : i32, i32
  }
  func.func @transform_1(%arg0: i32) -> (i32, i32) {
    %c0_i32 = arith.constant 0 : i32
    %c0_i32_0 = arith.constant 0 : i32
    %c0_i32_1 = arith.constant 0 : i32
    return %c0_i32, %c0_i32_0 : i32, i32
  }
  func.func @transform_2(%arg0: i32) -> (i32, i32) {
    %c0_i32 = arith.constant 0 : i32
    %c0_i32_0 = arith.constant 0 : i32
    %c0_i32_1 = arith.constant 0 : i32
    return %c0_i32, %c0_i32_0 : i32, i32
  }
  func.func @transform_3(%arg0: i32) -> (i32, i32) {
    %c0_i32 = arith.constant 0 : i32
    %c0_i32_0 = arith.constant 0 : i32
    %c0_i32_1 = arith.constant 0 : i32
    return %c0_i32, %c0_i32_0 : i32, i32
  }
  func.func @transform_4(%arg0: i32) -> (i32, i32) {
    %c0_i32 = arith.constant 0 : i32
    %c0_i32_0 = arith.constant 0 : i32
    %c0_i32_1 = arith.constant 0 : i32
    return %c0_i32, %c0_i32_0 : i32, i32
  }
  func.func @transform_5(%arg0: i32) -> (i32, i32) {
    %c0_i32 = arith.constant 0 : i32
    %c0_i32_0 = arith.constant 0 : i32
    %c0_i32_1 = arith.constant 0 : i32
    return %c0_i32, %c0_i32_0 : i32, i32
  }
  func.func @transform_6(%arg0: i32) -> i32 {
    %c0_i32 = arith.constant 0 : i32
    %c0_i32_0 = arith.constant 0 : i32
    return %c0_i32 : i32
  }
  func.func @transform_7(%arg0: i32) -> (i32, i32, i32) {
    %c0_i32 = arith.constant 0 : i32
    %c0_i32_0 = arith.constant 0 : i32
    %c0_i32_1 = arith.constant 0 : i32
    return %arg0, %c0_i32, %c0_i32_0 : i32, i32, i32
  }
}

</mosaic_0001>

<bundles_post_ra>
// kernel: tpu_custom_call.1
= control target key start
LH: loop header
LB: loop body
LE: loop exit
PB: predicated region body
PF: predicated region fallthrough
CT: control target
= control target key end

     0   :  { %s930_s0 = inlined_call_operand.vmem [shape: f32[128,32], index: 0, kind: input, shape index: {}]   ;;  %s931_s1 = inlined_call_operand.vmem [shape: f32[32,50], index: 1, kind: input, shape index: {}]   ;;  %s932_s2 = inlined_call_operand.vmem [shape: f32[1,50], index: 2, kind: input, shape index: {}]   ;;  %s933_s3 = inlined_call_operand.vmem [shape: f32[50,50], index: 3, kind: input, shape index: {}]   ;;  %s934_s4 = inlined_call_operand.vmem [shape: f32[1,50], index: 4, kind: input, shape index: {}]   ;;  %s935_s5 = inlined_call_operand.vmem [shape: f32[1,50], index: 5, kind: input, shape index: {}]   ;;  %s936_s6 = inlined_call_operand.<no memory space> [shape: f32[1], index: 6, kind: input, shape index: {}]   ;;  %s937_s7 = inlined_call_operand.hbm [shape: f32[1,1,128], index: 7, kind: output, shape index: {}]  }
   0x1   :  { %v47_v0 = vld [vmem:[%s931_s1 + $0x18] sm:$0xff]  ;;  %v46_v1 = vld [vmem:[%s931_s1 + $0x10] sm:$0xff]  ;;  %v45_v2 = vld [vmem:[%s931_s1 + $0x8] sm:$0xff] }
   0x2   :  { %113 = vmatpush.msra.mxu0 %v47_v0  ;;  %543 = vmatpush.msra.mxu3 %v47_v0  ;;  %v44_v3 = vld [vmem:[%s931_s1] sm:$0xff] }
   0x4   :  { %114 = vmatpush.msra.mxu0 %v46_v1  ;;  %544 = vmatpush.msra.mxu3 %v46_v1 }
   0x5   :  { %13 = vsyncpa [#allocation4], 0  ;;  %v28_v4 = vld [vmem:[%s930_s0] sm:$0xff]  ;;  %vm52_vm0 = vcmask 261120   ;;  %v29_v5 = vld [vmem:[%s930_s0 + $0x8] sm:$0xff]  ;;  %vm242_vm1 = vcmask 1041408  }
   0x6   :  { %115 = vmatpush.msra.mxu0 %v45_v2  ;;  %545 = vmatpush.msra.mxu3 %v45_v2  ;;  %v30_v6 = vld [vmem:[%s930_s0 + $0x10] sm:$0xff]  ;;  %v31_v7 = vld [vmem:[%s930_s0 + $0x18] sm:$0xff]  ;;  %v32_v8 = vld [vmem:[%s930_s0 + $0x20] sm:$0xff]  ;;  %vm193_vm2 = vcmask 408576   ;;  %vm434_vm3 = vcmask 130112   ;;  %vm438_vm4 = vcmask 195712  }
   0x7   :  { %v37_v9 = vld [vmem:[%s930_s0 + $0x48] sm:$0xff]  ;;  %v38_v11 = vld [vmem:[%s930_s0 + $0x50] sm:$0xff]  ;;  %v39_v13 = vld [vmem:[%s930_s0 + $0x58] sm:$0xff]  ;;  %vm442_vm5 = vcmask 261312   ;;  %vm446_vm6 = vcmask 326912   ;;  %vm450_vm7 = vcmask 392512  }
   0x8   :  { %116 = vmatpush.msra.mxu0 %v44_v3  ;;  %546 = vmatpush.msra.mxu3 %v44_v3  ;;  %v33_v10 = vld [vmem:[%s930_s0 + $0x28] sm:$0xff]  ;;  %v34_v12 = vld [vmem:[%s930_s0 + $0x30] sm:$0xff]  ;;  %v35_v16 = vld [vmem:[%s930_s0 + $0x38] sm:$0xff]  ;;  %vm454_vm8 = vcmask 458112   ;;  %vm458_vm9 = vcmask 523712   ;;  %vm462_vm10 = vcmask 589312  }
   0x9   :  { %510 = vmatmul.msk.f32.vlgmr.msra.gmra.mxu0 %vm52_vm0, %v28_v4  ;;  %519 = vmatmul.msk.f32.vlgmr.msra.gmra.mxu3 %vm52_vm0, %v37_v9  ;;  %v188_v14 = vld [vmem:[%s933_s3 + $0x30] sm:$0x3]  ;;  %v187_v15 = vld [vmem:[%s933_s3 + $0x28] sm:$0xff]  ;;  %v40_v17 = vld [vmem:[%s930_s0 + $0x60] sm:$0xff]  ;;  %vm466_vm11 = vcmask 654912   ;;  %vm470_vm12 = vcmask 720512  }
   0xa   :  { %526 = vmatpush.msk.msra.mxu1 %vm242_vm1, %v188_v14  ;;  %547 = vmatpush.msk.msra.mxu2 %vm242_vm1, %v188_v14  ;;  %v36_v18 = vld [vmem:[%s930_s0 + $0x40] sm:$0xff]  ;;  %v41_v19 = vld [vmem:[%s930_s0 + $0x68] sm:$0xff]  ;;  %v42_v20 = vld [vmem:[%s930_s0 + $0x70] sm:$0xff]  ;;  %vm474_vm13 = vcmask 786112   ;;  %vm478_vm14 = vcmask 851712   ;;  %vm482_vm15 = vcmask 917312  }
   0xb   :  { %v43_v21 = vld [vmem:[%s930_s0 + $0x78] sm:$0xff]  ;;  %v186_v22 = vld [vmem:[%s933_s3 + $0x20] sm:$0xff]  ;;  %v184_v24 = vld [vmem:[%s933_s3 + $0x10] sm:$0xff]  ;;  %s501_s13 = sshll.u32 %s937_s7, 4  ;;  %vm490_vm1 = vcmask 1048512   ;;  %s502_s13 = int_to_ptr.hbm [resolvable:$true] %s501_s13 }
   0xc   :  { %256 = vmatpush.msra.mxu1 %v187_v15  ;;  %548 = vmatpush.msra.mxu2 %v187_v15  ;;  %v185_v23 = vld [vmem:[%s933_s3 + $0x18] sm:$0xff]  ;;  %v183_v25 = vld [vmem:[%s933_s3 + $0x8] sm:$0xff]  ;;  %v182_v26 = vld [vmem:[%s933_s3] sm:$0xff] }
   0xd   :  { %v789_v27 = vld [vmem:[%s932_s2] ss:$0 sm:$0xff] }
   0xe   :  { %257 = vmatpush.msra.mxu1 %v186_v22  ;;  %549 = vmatpush.msra.mxu2 %v186_v22  ;;  %v832_v15 = vld [vmem:[%s935_s5] ss:$0 sm:$0xff] }
  0x10   :  { %258 = vmatpush.msra.mxu1 %v185_v23  ;;  %550 = vmatpush.msra.mxu2 %v185_v23 }
  0x11   :  { %511 = vmatmul.msk.f32.gmra.mxu0 %vm52_vm0, %v29_v5  ;;  %520 = vmatmul.msk.f32.gmra.mxu3 %vm52_vm0, %v38_v11 }
  0x12   :  { %259 = vmatpush.msra.mxu1 %v184_v24  ;;  %551 = vmatpush.msra.mxu2 %v184_v24 }
  0x14   :  { %260 = vmatpush.msra.mxu1 %v183_v25  ;;  %552 = vmatpush.msra.mxu2 %v183_v25 }
  0x16   :  { %261 = vmatpush.msra.mxu1 %v182_v26  ;;  %553 = vmatpush.msra.mxu2 %v182_v26 }
  0x19   :  { %512 = vmatmul.msk.f32.gmra.mxu0 %vm52_vm0, %v30_v6  ;;  %521 = vmatmul.msk.f32.gmra.mxu3 %vm52_vm0, %v39_v13 }
  0x21   :  { %513 = vmatmul.msk.f32.gmra.mxu0 %vm52_vm0, %v31_v7  ;;  %522 = vmatmul.msk.f32.gmra.mxu3 %vm52_vm0, %v40_v17 }
  0x29   :  { %514 = vmatmul.msk.f32.gmra.mxu0 %vm52_vm0, %v32_v8  ;;  %523 = vmatmul.msk.f32.gmra.mxu3 %vm52_vm0, %v41_v19 }
  0x31   :  { %515 = vmatmul.msk.f32.gmra.mxu0 %vm52_vm0, %v33_v10  ;;  %524 = vmatmul.msk.f32.gmra.mxu3 %vm52_vm0, %v42_v20 }
  0x39   :  { %516 = vmatmul.msk.f32.gmra.mxu0 %vm52_vm0, %v34_v12  ;;  %525 = vmatmul.msk.f32.gmra.mxu3 %vm52_vm0, %v43_v21  ;;  %v826_v12 = vld [vmem:[%s934_s4] ss:$0 sm:$0xff] }
  0x41   :  { %517 = vmatmul.msk.f32.gmra.mxu0 %vm52_vm0, %v35_v16 }
  0x49   :  { %518 = vmatmul.msk.f32.gmra.mxu0 %vm52_vm0, %v36_v18  ;;  %vm486_vm0 = vcmask 982912  }
  0x86   :  { %v118_v28 = vpop.f32.mrf.mxu0 }
  0x87   :  { %v119_v29 = vadd.f32 %v789_v27, %v118_v28 }
  0x89   :  { %558 = vtanh.f32 %v119_v29 }
  0x8c   :  { %v145_v48 = vpop.f32.mrf.mxu3 }
  0x8d   :  { %v146_v56 = vadd.f32 %v789_v27, %v145_v48 }
  0x8e   :  { %v121_v30 = vpop.f32.mrf.mxu0 }
  0x8f   :  { %v559_v31 = vpop.eup %558  ;;  %v122_v32 = vadd.f32 %v789_v27, %v121_v30 }
  0x90   :  { %527 = vmatmul.msk.f32.vlgmr.msra.gmra.mxu1 %vm193_vm2, %v559_v31 }
  0x91   :  { %560 = vtanh.f32 %v122_v32 }
  0x94   :  { %v148_v53 = vpop.f32.mrf.mxu3 }
  0x95   :  { %v149_v59 = vadd.f32 %v789_v27, %v148_v53 }
  0x96   :  { %v124_v33 = vpop.f32.mrf.mxu0 }
  0x97   :  { %v561_v34 = vpop.eup %560  ;;  %v125_v35 = vadd.f32 %v789_v27, %v124_v33 }
  0x98   :  { %528 = vmatmul.msk.f32.gmra.mxu1 %vm193_vm2, %v561_v34 }
  0x99   :  { %562 = vtanh.f32 %v125_v35 }
  0x9c   :  { %v151_v58 = vpop.f32.mrf.mxu3 }
  0x9d   :  { %v152_v62 = vadd.f32 %v789_v27, %v151_v58 }
  0x9e   :  { %v127_v36 = vpop.f32.mrf.mxu0 }
  0x9f   :  { %v563_v37 = vpop.eup %562  ;;  %v128_v38 = vadd.f32 %v789_v27, %v127_v36 }
  0xa0   :  { %529 = vmatmul.msk.f32.gmra.mxu1 %vm193_vm2, %v563_v37 }
  0xa1   :  { %564 = vtanh.f32 %v128_v38 }
  0xa4   :  { %v154_v61 = vpop.f32.mrf.mxu3 }
  0xa5   :  { %v155_v0 = vadd.f32 %v789_v27, %v154_v61 }
  0xa6   :  { %v130_v39 = vpop.f32.mrf.mxu0 }
  0xa7   :  { %v565_v40 = vpop.eup %564  ;;  %v131_v41 = vadd.f32 %v789_v27, %v130_v39 }
  0xa8   :  { %530 = vmatmul.msk.f32.gmra.mxu1 %vm193_vm2, %v565_v40 }
  0xa9   :  { %566 = vtanh.f32 %v131_v41 }
  0xac   :  { %v157_v1 = vpop.f32.mrf.mxu3 }
  0xad   :  { %v158_v3 = vadd.f32 %v789_v27, %v157_v1 }
  0xae   :  { %v133_v42 = vpop.f32.mrf.mxu0 }
  0xaf   :  { %v567_v43 = vpop.eup %566  ;;  %v134_v44 = vadd.f32 %v789_v27, %v133_v42 }
  0xb0   :  { %531 = vmatmul.msk.f32.gmra.mxu1 %vm193_vm2, %v567_v43 }
  0xb1   :  { %568 = vtanh.f32 %v134_v44 }
  0xb4   :  { %v160_v5 = vpop.f32.mrf.mxu3 }
  0xb5   :  { %v161_v6 = vadd.f32 %v789_v27, %v160_v5 }
  0xb6   :  { %v136_v45 = vpop.f32.mrf.mxu0 }
  0xb7   :  { %v569_v46 = vpop.eup %568  ;;  %v137_v47 = vadd.f32 %v789_v27, %v136_v45 }
  0xb8   :  { %532 = vmatmul.msk.f32.gmra.mxu1 %vm193_vm2, %v569_v46 }
  0xb9   :  { %570 = vtanh.f32 %v137_v47 }
  0xbc   :  { %v163_v8 = vpop.f32.mrf.mxu3 }
  0xbd   :  { %v164_v9 = vadd.f32 %v789_v27, %v163_v8 }
  0xbe   :  { %v139_v49 = vpop.f32.mrf.mxu0 }
  0xbf   :  { %v571_v50 = vpop.eup %570  ;;  %v140_v51 = vadd.f32 %v789_v27, %v139_v49 }
  0xc0   :  { %533 = vmatmul.msk.f32.gmra.mxu1 %vm193_vm2, %v571_v50 }
  0xc1   :  { %572 = vtanh.f32 %v140_v51 }
  0xc6   :  { %v142_v52 = vpop.f32.mrf.mxu0 }
  0xc7   :  { %v573_v54 = vpop.eup %572  ;;  %v143_v55 = vadd.f32 %v789_v27, %v142_v52 }
  0xc8   :  { %534 = vmatmul.msk.f32.gmra.mxu1 %vm193_vm2, %v573_v54 }
  0xc9   :  { %574 = vtanh.f32 %v143_v55 }
  0xca   :  { %576 = vtanh.f32 %v146_v56 }
  0xcb   :  { %578 = vtanh.f32 %v149_v59 }
  0xcc   :  { %580 = vtanh.f32 %v152_v62 }
  0xcd   :  { %582 = vtanh.f32 %v155_v0 }
  0xce   :  { %584 = vtanh.f32 %v158_v3 }
  0xcf   :  { %v575_v57 = vpop.eup %574  ;;  %586 = vtanh.f32 %v161_v6 }
  0xd0   :  { %535 = vmatmul.msk.f32.vlgmr.msra.gmra.mxu2 %vm193_vm2, %v575_v57  ;;  %v577_v60 = vpop.eup %576  ;;  %588 = vtanh.f32 %v164_v9 }
  0xd1   :  { %v579_v63 = vpop.eup %578 }
  0xd2   :  { %v581_v2 = vpop.eup %580 }
  0xd3   :  { %v583_v4 = vpop.eup %582 }
  0xd4   :  { %v585_v7 = vpop.eup %584 }
  0xd5   :  { %v587_v10 = vpop.eup %586 }
  0xd6   :  { %v589_v11 = vpop.eup %588 }
  0xd8   :  { %536 = vmatmul.msk.f32.gmra.mxu2 %vm193_vm2, %v577_v60 }
  0xe0   :  { %537 = vmatmul.msk.f32.gmra.mxu2 %vm193_vm2, %v579_v63 }
  0xe8   :  { %538 = vmatmul.msk.f32.gmra.mxu2 %vm193_vm2, %v581_v2 }
  0xf0   :  { %539 = vmatmul.msk.f32.gmra.mxu2 %vm193_vm2, %v583_v4 }
  0xf8   :  { %540 = vmatmul.msk.f32.gmra.mxu2 %vm193_vm2, %v585_v7 }
 0x100   :  { %541 = vmatmul.msk.f32.gmra.mxu2 %vm193_vm2, %v587_v10 }
 0x108   :  { %542 = vmatmul.msk.f32.gmra.mxu2 %vm193_vm2, %v589_v11 }
 0x10d   :  { %v263_v13 = vpop.f32.mrf.mxu1 }
 0x10e   :  { %v264_v14 = vadd.f32 %v826_v12, %v263_v13 }
 0x110   :  { %590 = vtanh.f32 %v264_v14 }
 0x115   :  { %v266_v16 = vpop.f32.mrf.mxu1 }
 0x116   :  { %v591_v17 = vpop.eup %590  ;;  %v267_v18 = vadd.f32 %v826_v12, %v266_v16 }
 0x117   :  { %v331_v19 = vmul.f32 %v591_v17, %v832_v15 }
 0x118   :  { %592 = vtanh.f32 %v267_v18 }
 0x119   :  { %v347_v20 = vsel %vm193_vm2, %v331_v19, 0.0 }
 0x11a   :  { %348 = vadd.xlane.f32.xlu0 %v347_v20 }
 0x11d   :  { %v269_v21 = vpop.f32.mrf.mxu1 }
 0x11e   :  { %v593_v22 = vpop.eup %592  ;;  %v270_v23 = vadd.f32 %v826_v12, %v269_v21 }
 0x11f   :  { %v332_v24 = vmul.f32 %v593_v22, %v832_v15 }
 0x120   :  { %594 = vtanh.f32 %v270_v23 }
 0x121   :  { %v350_v25 = vsel %vm193_vm2, %v332_v24, 0.0 }
 0x122   :  { %351 = vadd.xlane.f32.xlu0 %v350_v25 }
 0x125   :  { %v272_v26 = vpop.f32.mrf.mxu1 }
 0x126   :  { %v595_v27 = vpop.eup %594  ;;  %v273_v28 = vadd.f32 %v826_v12, %v272_v26 }
 0x127   :  { %v333_v29 = vmul.f32 %v595_v27, %v832_v15 }
 0x128   :  { %596 = vtanh.f32 %v273_v28 }
 0x129   :  { %v353_v30 = vsel %vm193_vm2, %v333_v29, 0.0 }
 0x12a   :  { %354 = vadd.xlane.f32.xlu1 %v353_v30 }
 0x12d   :  { %v275_v31 = vpop.f32.mrf.mxu1 }
 0x12e   :  { %v597_v32 = vpop.eup %596  ;;  %v276_v33 = vadd.f32 %v826_v12, %v275_v31 }
 0x12f   :  { %v334_v34 = vmul.f32 %v597_v32, %v832_v15 }
 0x130   :  { %598 = vtanh.f32 %v276_v33 }
 0x131   :  { %v356_v35 = vsel %vm193_vm2, %v334_v34, 0.0 }
 0x132   :  { %357 = vadd.xlane.f32.xlu1 %v356_v35 }
 0x135   :  { %v278_v36 = vpop.f32.mrf.mxu1 }
 0x136   :  { %v599_v37 = vpop.eup %598  ;;  %v279_v38 = vadd.f32 %v826_v12, %v278_v36 }
 0x137   :  { %v335_v39 = vmul.f32 %v599_v37, %v832_v15 }
 0x138   :  { %600 = vtanh.f32 %v279_v38  ;;  %v429_v38 = vlaneseq }
 0x139   :  { %v359_v40 = vsel %vm193_vm2, %v335_v39, 0.0 }
 0x13a   :  { %360 = vadd.xlane.f32.xlu2 %v359_v40 }
 0x13d   :  { %v281_v41 = vpop.f32.mrf.mxu1 }
 0x13e   :  { %v601_v42 = vpop.eup %600  ;;  %v282_v43 = vadd.f32 %v826_v12, %v281_v41  ;;  %v881_v41 = vand.u32 127, %v429_v38 }
 0x13f   :  { %v336_v44 = vmul.f32 %v601_v42, %v832_v15  ;;  %v886_v42 = vstv %s936_s6  ;;  %s648_s6 = smov [#allocation3]  }
 0x140   :  { %602 = vtanh.f32 %v282_v43  ;;  %v488_v38 = vadd.s32 4294967176, %v881_v41  ;;  %s499_s10 = sshll.u32 %s648_s6, 4  ;;  %s500_s10 = int_to_ptr.vmem [resolvable:$true] %s499_s10 }
 0x141   :  { %v362_v45 = vsel %vm193_vm2, %v336_v44, 0.0 }
 0x142   :  { %363 = vadd.xlane.f32.xlu2 %v362_v45  ;;  %v436_v45 = vadd.s32 4294967280, %v881_v41 }
 0x145   :  { %v284_v46 = vpop.f32.mrf.mxu1 }
 0x146   :  { %v603_v47 = vpop.eup %602  ;;  %v285_v48 = vadd.f32 %v826_v12, %v284_v46 }
 0x147   :  { %v337_v49 = vmul.f32 %v603_v47, %v832_v15  ;;  %v440_v47 = vadd.s32 4294967272, %v881_v41 }
 0x148   :  { %604 = vtanh.f32 %v285_v48 }
 0x149   :  { %v365_v50 = vsel %vm193_vm2, %v337_v49, 0.0 }
 0x14a   :  { %366 = vadd.xlane.f32.xlu0 %v365_v50 }
 0x14e   :  { %v605_v51 = vpop.eup %604 }
 0x14f   :  { %v338_v52 = vmul.f32 %v605_v51, %v832_v15 }
 0x151   :  { %v368_v53 = vsel %vm193_vm2, %v338_v52, 0.0  ;;  %v444_v52 = vadd.s32 4294967264, %v881_v41 }
 0x152   :  { %369 = vadd.xlane.f32.xlu1 %v368_v53 }
 0x153   :  { %v287_v54 = vpop.f32.mrf.mxu2 }
 0x154   :  { %v288_v55 = vadd.f32 %v826_v12, %v287_v54 }
 0x156   :  { %606 = vtanh.f32 %v288_v55 }
 0x15b   :  { %v290_v56 = vpop.f32.mrf.mxu2 }
 0x15c   :  { %v607_v57 = vpop.eup %606  ;;  %v291_v58 = vadd.f32 %v826_v12, %v290_v56 }
 0x15d   :  { %v339_v59 = vmul.f32 %v607_v57, %v832_v15 }
 0x15e   :  { %608 = vtanh.f32 %v291_v58  ;;  %v448_v58 = vadd.s32 4294967256, %v881_v41 }
 0x15f   :  { %v371_v60 = vsel %vm193_vm2, %v339_v59, 0.0 }
 0x160   :  { %372 = vadd.xlane.f32.xlu2 %v371_v60 }
 0x163   :  { %v293_v61 = vpop.f32.mrf.mxu2 }
 0x164   :  { %v609_v62 = vpop.eup %608  ;;  %v294_v63 = vadd.f32 %v826_v12, %v293_v61  ;;  %v452_v61 = vadd.s32 4294967248, %v881_v41 }
 0x165   :  { %v340_v0 = vmul.f32 %v609_v62, %v832_v15 }
 0x166   :  { %610 = vtanh.f32 %v294_v63 }
 0x167   :  { %v374_v1 = vsel %vm193_vm2, %v340_v0, 0.0  ;;  %v456_v0 = vadd.s32 4294967240, %v881_v41 }
 0x168   :  { %375 = vadd.xlane.f32.xlu0 %v374_v1 }
 0x16b   :  { %v296_v2 = vpop.f32.mrf.mxu2 }
 0x16c   :  { %v611_v3 = vpop.eup %610  ;;  %v297_v4 = vadd.f32 %v826_v12, %v296_v2 }
 0x16d   :  { %v341_v5 = vmul.f32 %v611_v3, %v832_v15  ;;  %v460_v3 = vadd.s32 4294967232, %v881_v41 }
 0x16e   :  { %612 = vtanh.f32 %v297_v4 }
 0x16f   :  { %v377_v6 = vsel %vm193_vm2, %v341_v5, 0.0 }
 0x170   :  { %378 = vadd.xlane.f32.xlu1 %v377_v6 }
 0x173   :  { %v299_v7 = vpop.f32.mrf.mxu2 }
 0x174   :  { %v613_v8 = vpop.eup %612  ;;  %v300_v9 = vadd.f32 %v826_v12, %v299_v7  ;;  %v464_v7 = vadd.s32 4294967224, %v881_v41 }
 0x175   :  { %v342_v10 = vmul.f32 %v613_v8, %v832_v15 }
 0x176   :  { %614 = vtanh.f32 %v300_v9 }
 0x177   :  { %v380_v11 = vsel %vm193_vm2, %v342_v10, 0.0 }
 0x178   :  { %381 = vadd.xlane.f32.xlu2 %v380_v11  ;;  %v468_v11 = vadd.s32 4294967216, %v881_v41 }
 0x17b   :  { %v302_v13 = vpop.f32.mrf.mxu2 }
 0x17c   :  { %v615_v14 = vpop.eup %614  ;;  %v303_v16 = vadd.f32 %v826_v12, %v302_v13 }
 0x17d   :  { %v343_v17 = vmul.f32 %v615_v14, %v832_v15 }
 0x17e   :  { %616 = vtanh.f32 %v303_v16 }
 0x17f   :  { %v383_v18 = vsel %vm193_vm2, %v343_v17, 0.0 }
 0x180   :  { %384 = vadd.xlane.f32.xlu0 %v383_v18  ;;  %v472_v18 = vadd.s32 4294967208, %v881_v41 }
 0x183   :  { %v305_v19 = vpop.f32.mrf.mxu2 }
 0x184   :  { %v617_v20 = vpop.eup %616  ;;  %v306_v21 = vadd.f32 %v826_v12, %v305_v19 }
 0x185   :  { %v344_v22 = vmul.f32 %v617_v20, %v832_v15 }
 0x186   :  { %618 = vtanh.f32 %v306_v21 }
 0x187   :  { %v386_v23 = vsel %vm193_vm2, %v344_v22, 0.0  ;;  %v476_v22 = vadd.s32 4294967200, %v881_v41 }
 0x188   :  { %387 = vadd.xlane.f32.xlu1 %v386_v23 }
 0x18b   :  { %v308_v24 = vpop.f32.mrf.mxu2 }
 0x18c   :  { %v619_v25 = vpop.eup %618  ;;  %v309_v26 = vadd.f32 %v826_v12, %v308_v24 }
 0x18d   :  { %v345_v27 = vmul.f32 %v619_v25, %v832_v15  ;;  %v349_v32 = vpop.xlane.xlu0 %348 }
 0x18e   :  { %620 = vtanh.f32 %v309_v26  ;;  %v397_v44 = vadd.f32 %v886_v42, %v349_v32  ;;  %v480_v26 = vadd.s32 4294967192, %v881_v41 }
 0x18f   :  { %v389_v28 = vsel %vm193_vm2, %v345_v27, 0.0 }
 0x190   :  { %390 = vadd.xlane.f32.xlu2 %v389_v28  ;;  %v431_v55 = vperm.slane %v397_v44, %v881_v41 }
 0x194   :  { %v621_v29 = vpop.eup %620 }
 0x195   :  { %v346_v30 = vmul.f32 %v621_v29, %v832_v15  ;;  %v352_v35 = vpop.xlane.xlu0 %351  ;;  %v432_v15 = vadd.s32 4294967288, %v881_v41 }
 0x196   :  { %v398_v43 = vadd.f32 %v886_v42, %v352_v35 }
 0x197   :  { %v392_v31 = vsel %vm193_vm2, %v346_v30, 0.0  ;;  %v484_v30 = vadd.s32 4294967184, %v881_v41 }
 0x198   :  { %393 = vadd.xlane.f32.xlu0 %v392_v31  ;;  %v433_v50 = vperm.slane %v398_v43, %v432_v15 }
 0x19a   :  { %v435_v60 = vsel %vm434_vm3, %v433_v50, %v431_v55 }
 0x19d   :  { %v355_v33 = vpop.xlane.xlu1 %354 }
 0x19e   :  { %v399_v46 = vadd.f32 %v886_v42, %v355_v33 }
 0x1a0   :  { %v437_v56 = vperm.slane %v399_v46, %v436_v45 }
 0x1a2   :  { %v439_v2 = vsel %vm438_vm4, %v437_v56, %v435_v60 }
 0x1a5   :  { %v358_v36 = vpop.xlane.xlu1 %357 }
 0x1a6   :  { %v400_v48 = vadd.f32 %v886_v42, %v358_v36 }
 0x1a8   :  { %v441_v57 = vperm.slane %v400_v48, %v440_v47 }
 0x1aa   :  { %v443_v5 = vsel %vm442_vm5, %v441_v57, %v439_v2 }
 0x1ad   :  { %v361_v34 = vpop.xlane.xlu2 %360 }
 0x1ae   :  { %v401_v53 = vadd.f32 %v886_v42, %v361_v34 }
 0x1b0   :  { %v445_v63 = vperm.slane %v401_v53, %v444_v52 }
 0x1b2   :  { %v447_v16 = vsel %vm446_vm6, %v445_v63, %v443_v5 }
 0x1b5   :  { %v364_v37 = vpop.xlane.xlu2 %363 }
 0x1b6   :  { %v402_v59 = vadd.f32 %v886_v42, %v364_v37 }
 0x1b8   :  { %v449_v6 = vperm.slane %v402_v59, %v448_v58 }
 0x1ba   :  { %v451_v24 = vsel %vm450_vm7, %v449_v6, %v447_v16 }
 0x1bd   :  { %v367_v12 = vpop.xlane.xlu0 %366 }
 0x1be   :  { %v403_v62 = vadd.f32 %v886_v42, %v367_v12 }
 0x1c0   :  { %v453_v10 = vperm.slane %v403_v62, %v452_v61 }
 0x1c2   :  { %v455_v28 = vsel %vm454_vm8, %v453_v10, %v451_v24 }
 0x1c5   :  { %v370_v39 = vpop.xlane.xlu1 %369 }
 0x1c6   :  { %v404_v1 = vadd.f32 %v886_v42, %v370_v39 }
 0x1c8   :  { %v457_v17 = vperm.slane %v404_v1, %v456_v0 }
 0x1ca   :  { %v459_v32 = vsel %vm458_vm9, %v457_v17, %v455_v28 }
 0x1d3   :  { %v373_v40 = vpop.xlane.xlu2 %372 }
 0x1d4   :  { %v405_v4 = vadd.f32 %v886_v42, %v373_v40 }
 0x1d6   :  { %v461_v21 = vperm.slane %v405_v4, %v460_v3 }
 0x1d8   :  { %v463_v34 = vsel %vm462_vm10, %v461_v21, %v459_v32 }
 0x1db   :  { %v376_v49 = vpop.xlane.xlu0 %375 }
 0x1dc   :  { %v406_v8 = vadd.f32 %v886_v42, %v376_v49 }
 0x1de   :  { %v465_v25 = vperm.slane %v406_v8, %v464_v7 }
 0x1e0   :  { %v467_v36 = vsel %vm466_vm11, %v465_v25, %v463_v34 }
 0x1e3   :  { %v379_v51 = vpop.xlane.xlu1 %378 }
 0x1e4   :  { %v407_v13 = vadd.f32 %v886_v42, %v379_v51 }
 0x1e6   :  { %v469_v29 = vperm.slane %v407_v13, %v468_v11 }
 0x1e8   :  { %v471_v12 = vsel %vm470_vm12, %v469_v29, %v467_v36 }
 0x1eb   :  { %v382_v54 = vpop.xlane.xlu2 %381 }
 0x1ec   :  { %v408_v19 = vadd.f32 %v886_v42, %v382_v54 }
 0x1ee   :  { %v473_v33 = vperm.slane %v408_v19, %v472_v18 }
 0x1f0   :  { %v475_v15 = vsel %vm474_vm13, %v473_v33, %v471_v12 }
 0x1f3   :  { %v385_v9 = vpop.xlane.xlu0 %384 }
 0x1f4   :  { %v409_v23 = vadd.f32 %v886_v42, %v385_v9 }
 0x1f6   :  { %v477_v35 = vperm.slane %v409_v23, %v476_v22 }
 0x1f8   :  { %v479_v44 = vsel %vm478_vm14, %v477_v35, %v475_v15 }
 0x1fb   :  { %v388_v14 = vpop.xlane.xlu1 %387 }
 0x1fc   :  { %v410_v27 = vadd.f32 %v886_v42, %v388_v14 }
 0x1fe   :  { %v481_v37 = vperm.slane %v410_v27, %v480_v26 }
 0x200   :  { %v483_v45 = vsel %vm482_vm15, %v481_v37, %v479_v44 }
 0x203   :  { %v391_v20 = vpop.xlane.xlu2 %390 }
 0x204   :  { %v411_v31 = vadd.f32 %v886_v42, %v391_v20 }
 0x206   :  { %v485_v39 = vperm.slane %v411_v31, %v484_v30 }
 0x208   :  { %v487_v47 = vsel %vm486_vm0, %v485_v39, %v483_v45 }
 0x20b   :  { %v394_v40 = vpop.xlane.xlu0 %393 }
 0x20c   :  { %v412_v43 = vadd.f32 %v886_v42, %v394_v40 }
 0x20e   :  { %v489_v46 = vperm.slane %v412_v43, %v488_v38 }
 0x210   :  { %v491_v41 = vsel %vm490_vm1, %v489_v46, %v487_v47 }
 0x211   :  { %493 = vst [vmem:[#allocation3] sm:$0x1] %v491_v41 }
 0x212   :  { %504 = dma.vmem_to_hbm [thread:$0]  %s500_s10, 16, %s502_s13, [#allocation4]  }
 0x213   :  { %646 = dma.done.wait [#allocation4], 16  }
 0x214   :  { %647 = vsyncadd [#allocation4], 4294967280 }
 0x215   :  { %509 = vsyncpa [#allocation4], 1 }

</bundles_post_ra>
